<compile_context>
chip_gen: v7x
topology: tpu7x:2x2x1
jax: 0.10.0
libtpu: 0.0.40
codegen_flags: <defaults>
</compile_context>

<pallas_src>
import functools

import jax
import jax.numpy as jnp
from jax import lax
from jax.experimental import pallas as pl
from jax.experimental.pallas import tpu as pltpu


def _round_up(x, m):
    return ((x + m - 1) // m) * m


def _affine_params_kernel(v_ref, redw_ref, sqw_ref, scal_ref, out_ref, *, n):
    """One batch tile, transposed (lane-dense) epilogue.

    v_ref    : (TB, 2N) interleaved (x0, y0, x1, y1, ...) landmarks, native dtype
    redw_ref : (8, 2N) f32; rows = [x-mean sel, y-mean sel, dot w, cross w, 0..]
    sqw_ref  : (8, 2N) f32; row 4 = ones (sum-of-squares selector)
    scal_ref : (4,)    f32 SMEM scalars [dst_mean_x, dst_mean_y, sum(wx), sum(wy)]
    out_ref  : (8, TB) f32 output slab; rows 0..5 = [a, b, -b, a, tx, ty]
    """
    v = v_ref[...].astype(jnp.float32)          # no-op for f32 inputs

    # All cross-lane reductions as two NT matmuls on the otherwise-idle MXU.
    # out[r, t] = sum_k W[r, k] * v[t, k]  ->  per-row results are lane-dense rows.
    dims = (((1,), (1,)), ((), ()))
    red = lax.dot_general(redw_ref[...], v, dims,
                          preferred_element_type=jnp.float32)
    red = red + lax.dot_general(sqw_ref[...], v * v, dims,
                                preferred_element_type=jnp.float32)

    mx = red[0:1, :]          # (1, TB) per-row source centroid x
    my = red[1:2, :]          # per-row source centroid y
    dot = red[2:3, :]         # uncentered <src, dst - dst_mean>
    cross = red[3:4, :]       # uncentered 2-D cross term
    sumsq = red[4:5, :]       # sum(x^2 + y^2)

    dmx = scal_ref[0]
    dmy = scal_ref[1]
    swx = scal_ref[2]         # sum(wx): ~0, but not exactly 0 in f32
    swy = scal_ref[3]

    # Centering correction for the dot / cross reductions.
    dot = dot - mx * swx - my * swy
    cross = cross - mx * swy + my * swx

    # ||src - src_mean||^2 = sum(x^2 + y^2) - N * (mx^2 + my^2)
    src_norm_sq = sumsq - n * (mx * mx + my * my)
    inv = 1.0 / src_norm_sq   # matches PyTorch: no eps guard on degenerate input
    a = dot * inv
    b = cross * inv

    # t = dst_mean - [mx, my] @ [[a, b], [-b, a]]
    tx = dmx - (mx * a - my * b)
    ty = dmy - (mx * b + my * a)

    # Lane-dense row stores (TB is a multiple of 128 -> full-lane stores).
    zero = jnp.zeros_like(a)
    out_ref[0:1, :] = a
    out_ref[1:2, :] = b
    out_ref[2:3, :] = -b
    out_ref[3:4, :] = a
    out_ref[4:5, :] = tx
    out_ref[5:6, :] = ty
    out_ref[6:7, :] = zero
    out_ref[7:8, :] = zero


def _choose_block(batch, two_n, itemsize, block_b):
    if block_b is not None:
        return max(128, _round_up(block_b, 128))
    # >= ~8 grid steps when the batch allows (DMA overlap + both v7x cores fed),
    # cap at 1024 rows, and keep the double-buffered input tile <= ~8 MiB so it
    # fits every generation's scoped-VMEM budget with headroom.
    tb = min(1024, _round_up(max(1, pl.cdiv(batch, 8)), 128))
    vmem_cap = (8 * 1024 * 1024) // max(1, 2 * two_n * itemsize)
    vmem_cap = max(128, (vmem_cap // 128) * 128)
    return max(128, min(tb, vmem_cap))


def estimate_affine_params(transformed_shape, mean_shape, *, block_b=None):
    """transformed_shape: (B, 2N) or (B, N, 2); mean_shape: (N, 2)  ->  (B, 6) f32."""
    batch = transformed_shape.shape[0]
    ts = transformed_shape.reshape(batch, -1)      # (B, 2N), native dtype (no pre-cast)
    two_n = ts.shape[1]
    n = two_n // 2
    assert mean_shape.shape == (n, 2)
    ms = mean_shape.astype(jnp.float32)

    # ---- constants hoisted out of the kernel (mean_shape is a fixed buffer) ----
    dst_mean = jnp.mean(ms, axis=0)                # (2,)
    w = ms - dst_mean[None, :]                     # centered mean shape
    wx, wy = w[:, 0], w[:, 1]
    even = 2 * jnp.arange(n)
    odd = even + 1

    # redw @ V^T -> rows [mean_x, mean_y, dot, cross, 0, 0, 0, 0]
    redw = jnp.zeros((8, two_n), jnp.float32)
    redw = redw.at[0, even].set(1.0 / n)
    redw = redw.at[1, odd].set(1.0 / n)
    redw = redw.at[2, even].set(wx)
    redw = redw.at[2, odd].set(wy)
    redw = redw.at[3, even].set(wy)
    redw = redw.at[3, odd].set(-wx)

    # sqw @ (V*V)^T -> row 4 = sum(x^2 + y^2)
    sqw = jnp.zeros((8, two_n), jnp.float32).at[4, :].set(1.0)

    # SMEM scalars: destination centroid + residual sums of the centered mean shape.
    scal = jnp.stack([dst_mean[0], dst_mean[1],
                      jnp.sum(wx), jnp.sum(wy)]).astype(jnp.float32)

    tb = _choose_block(batch, two_n, jnp.dtype(ts.dtype).itemsize, block_b)
    grid = pl.cdiv(batch, tb)
    n_cols = grid * tb          # output padded to whole blocks (few KB); input is NOT padded

    out = pl.pallas_call(
        functools.partial(_affine_params_kernel, n=float(n)),
        out_shape=jax.ShapeDtypeStruct((8, n_cols), jnp.float32),
        grid_spec=pltpu.PrefetchScalarGridSpec(
            num_scalar_prefetch=0,
            grid=(grid,),
            in_specs=[
                pl.BlockSpec((tb, two_n), lambda i: (i, 0)),        # streamed batch tile
                pl.BlockSpec((8, two_n), lambda i: (0, 0)),         # constant, resident
                pl.BlockSpec((8, two_n), lambda i: (0, 0)),         # constant, resident
                pl.BlockSpec(memory_space=pltpu.MemorySpace.SMEM),  # scalars in SMEM
            ],
            out_specs=pl.BlockSpec((8, tb), lambda i: (0, i)),
        ),
        compiler_params=pltpu.CompilerParams(
            dimension_semantics=("parallel",),                      # 2 TCs on v7x
            vmem_limit_bytes=32 * 1024 * 1024),                     # v5e default is ~16 MiB
    )(ts, redw, sqw, scal)

    # Rows 0..5 = [a, b, -b, a, tx, ty]; drop padded columns, transpose to (B, 6).
    return jnp.transpose(out[:6, :batch])


def _reference(transformed_shape, mean_shape):
    # Pure-JAX transcription of the PyTorch forward (centered two-pass sums).
    batch = transformed_shape.shape[0]
    source = transformed_shape.reshape(batch, -1, 2).astype(jnp.float32)
    ms = mean_shape.astype(jnp.float32)
    dst_mean = ms.mean(axis=0)                                  # (2,)
    src_mean = source.mean(axis=1)                              # (B, 2)
    src_vec = (source - src_mean[:, None, :]).reshape(batch, -1)
    dest_vec = (ms - dst_mean[None, :]).reshape(-1)
    src_norm_sq = jnp.sum(src_vec * src_vec, axis=1)
    a = jnp.sum(src_vec * dest_vec[None, :], axis=1) / src_norm_sq
    b = jnp.sum(src_vec[:, 0::2] * dest_vec[None, 1::2]
                - src_vec[:, 1::2] * dest_vec[None, 0::2], axis=1) / src_norm_sq
    mx, my = src_mean[:, 0], src_mean[:, 1]
    tx = dst_mean[0] - (mx * a - my * b)
    ty = dst_mean[1] - (mx * b + my * a)
    return jnp.stack([a, b, -b, a, tx, ty], axis=1)


if __name__ == "__main__":
    key = jax.random.PRNGKey(0)
    k1, k2 = jax.random.split(key)

    batch, n_landmarks = 2, 8
    # Snap test data to coarse binary fractions so every product / partial sum is
    # (near-)exactly representable regardless of which MXU precision Mosaic picks
    # for the in-kernel f32 contractions.
    mean_shape = jnp.round(
        jnp.clip(jax.random.normal(k1, (n_landmarks, 2), dtype=jnp.float32),
                 -2.0, 2.0) * 4.0) / 4.0
    transformed_shape = jnp.round(
        jnp.clip(jax.random.normal(k2, (batch, n_landmarks * 2), dtype=jnp.float32),
                 -2.0, 2.0) * 4.0) / 4.0

    out = estimate_affine_params(transformed_shape, mean_shape)
    out = jax.block_until_ready(out)

    ref = _reference(transformed_shape, mean_shape)
    assert out.shape == (batch, 6)
    assert jnp.allclose(out, ref, atol=1e-5, rtol=1e-4), (out, ref)

    print("KERNEL_OK")
</pallas_src>

<mosaic_0001>
module attributes {stable_mosaic.version = 11 : i64} {
  func.func @_affine_params_kernel(%arg0: i32, %arg1: memref<128x16xf32, #tpu.memory_space<vmem>>, %arg2: memref<8x16xf32, #tpu.memory_space<vmem>>, %arg3: memref<8x16xf32, #tpu.memory_space<vmem>>, %arg4: memref<4xf32, #tpu.memory_space<smem>>, %arg5: memref<8x128xf32, #tpu.memory_space<vmem>>) attributes {dimension_semantics = [#tpu.dimension_semantics<parallel>], iteration_bounds = array<i64: 1>, scalar_prefetch = 0 : i64, scratch_operands = 0 : i64, tpu.core_type = #tpu.core_type<tc>, window_params = [{transform_indices = @transform_0, window_bounds = array<i64: 128, 16>}, {pipeline_mode = #tpu.pipeline_mode<synchronous>, transform_indices = @transform_1, window_bounds = array<i64: 8, 16>}, {pipeline_mode = #tpu.pipeline_mode<synchronous>, transform_indices = @transform_2, window_bounds = array<i64: 8, 16>}, {transform_indices = @transform_3, window_bounds = array<i64: 4>}, {transform_indices = @transform_4, window_bounds = array<i64: 8, 128>}]} {
    %c0 = arith.constant 0 : index
    %c0_0 = arith.constant 0 : index
    %0 = vector.load %arg1[%c0, %c0_0] : memref<128x16xf32, #tpu.memory_space<vmem>>, vector<128x16xf32>
    %c0_1 = arith.constant 0 : index
    %c0_2 = arith.constant 0 : index
    %1 = vector.load %arg2[%c0_1, %c0_2] : memref<8x16xf32, #tpu.memory_space<vmem>>, vector<8x16xf32>
    %cst = arith.constant dense<0.000000e+00> : vector<8x128xf32>
    %2 = tpu.matmul %1, %0, %cst {dimension_numbers = #tpu.dot_dimension_numbers<[1], [1], [0], [0], [0, 0, 1, 0], [], []>} : vector<8x16xf32>, vector<128x16xf32>, vector<8x128xf32> -> vector<8x128xf32>
    %c0_3 = arith.constant 0 : index
    %c0_4 = arith.constant 0 : index
    %3 = vector.load %arg3[%c0_3, %c0_4] : memref<8x16xf32, #tpu.memory_space<vmem>>, vector<8x16xf32>
    %4 = arith.mulf %0, %0 : vector<128x16xf32>
    %cst_5 = arith.constant dense<0.000000e+00> : vector<8x128xf32>
    %5 = tpu.matmul %3, %4, %cst_5 {dimension_numbers = #tpu.dot_dimension_numbers<[1], [1], [0], [0], [0, 0, 1, 0], [], []>} : vector<8x16xf32>, vector<128x16xf32>, vector<8x128xf32> -> vector<8x128xf32>
    %6 = arith.addf %2, %5 : vector<8x128xf32>
    %7 = vector.extract_strided_slice %6 {offsets = [0, 0], sizes = [1, 128], strides = [1, 1]} : vector<8x128xf32> to vector<1x128xf32>
    %8 = vector.extract_strided_slice %6 {offsets = [1, 0], sizes = [1, 128], strides = [1, 1]} : vector<8x128xf32> to vector<1x128xf32>
    %9 = vector.extract_strided_slice %6 {offsets = [2, 0], sizes = [1, 128], strides = [1, 1]} : vector<8x128xf32> to vector<1x128xf32>
    %10 = vector.extract_strided_slice %6 {offsets = [3, 0], sizes = [1, 128], strides = [1, 1]} : vector<8x128xf32> to vector<1x128xf32>
    %11 = vector.extract_strided_slice %6 {offsets = [4, 0], sizes = [1, 128], strides = [1, 1]} : vector<8x128xf32> to vector<1x128xf32>
    %c0_6 = arith.constant 0 : index
    %12 = memref.load %arg4[%c0_6] : memref<4xf32, #tpu.memory_space<smem>>
    %c1 = arith.constant 1 : index
    %13 = memref.load %arg4[%c1] : memref<4xf32, #tpu.memory_space<smem>>
    %c2 = arith.constant 2 : index
    %14 = memref.load %arg4[%c2] : memref<4xf32, #tpu.memory_space<smem>>
    %c3 = arith.constant 3 : index
    %15 = memref.load %arg4[%c3] : memref<4xf32, #tpu.memory_space<smem>>
    %16 = vector.broadcast %14 : f32 to vector<1x128xf32>
    %17 = arith.mulf %7, %16 : vector<1x128xf32>
    %18 = arith.subf %9, %17 : vector<1x128xf32>
    %19 = vector.broadcast %15 : f32 to vector<1x128xf32>
    %20 = arith.mulf %8, %19 : vector<1x128xf32>
    %21 = arith.subf %18, %20 : vector<1x128xf32>
    %22 = vector.broadcast %15 : f32 to vector<1x128xf32>
    %23 = arith.mulf %7, %22 : vector<1x128xf32>
    %24 = arith.subf %10, %23 : vector<1x128xf32>
    %25 = vector.broadcast %14 : f32 to vector<1x128xf32>
    %26 = arith.mulf %8, %25 : vector<1x128xf32>
    %27 = arith.addf %24, %26 : vector<1x128xf32>
    %28 = arith.mulf %7, %7 : vector<1x128xf32>
    %29 = arith.mulf %8, %8 : vector<1x128xf32>
    %30 = arith.addf %28, %29 : vector<1x128xf32>
    %cst_7 = arith.constant 8.000000e+00 : f32
    %31 = vector.broadcast %cst_7 : f32 to vector<1x128xf32>
    %32 = arith.mulf %31, %30 : vector<1x128xf32>
    %33 = arith.subf %11, %32 : vector<1x128xf32>
    %cst_8 = arith.constant 1.000000e+00 : f32
    %34 = vector.broadcast %cst_8 : f32 to vector<1x128xf32>
    %35 = arith.divf %34, %33 : vector<1x128xf32>
    %36 = arith.mulf %21, %35 : vector<1x128xf32>
    %37 = arith.mulf %27, %35 : vector<1x128xf32>
    %38 = arith.mulf %7, %36 : vector<1x128xf32>
    %39 = arith.mulf %8, %37 : vector<1x128xf32>
    %40 = arith.subf %38, %39 : vector<1x128xf32>
    %41 = vector.broadcast %12 : f32 to vector<1x128xf32>
    %42 = arith.subf %41, %40 : vector<1x128xf32>
    %43 = arith.mulf %7, %37 : vector<1x128xf32>
    %44 = arith.mulf %8, %36 : vector<1x128xf32>
    %45 = arith.addf %43, %44 : vector<1x128xf32>
    %46 = vector.broadcast %13 : f32 to vector<1x128xf32>
    %47 = arith.subf %46, %45 : vector<1x128xf32>
    %cst_9 = arith.constant 0.000000e+00 : f32
    %48 = vector.broadcast %cst_9 : f32 to vector<1x128xf32>
    %c0_10 = arith.constant 0 : index
    %c0_11 = arith.constant 0 : index
    %49 = vector.load %arg5[%c0_10, %c0_11] : memref<8x128xf32, #tpu.memory_space<vmem>>, vector<1x128xf32>
    tpu.vector_store %arg5[%c0_10, %c0_11], %36 {strides = array<i32>} : memref<8x128xf32, #tpu.memory_space<vmem>>, vector<1x128xf32>,
    %c1_12 = arith.constant 1 : index
    %c0_13 = arith.constant 0 : index
    %50 = vector.load %arg5[%c1_12, %c0_13] : memref<8x128xf32, #tpu.memory_space<vmem>>, vector<1x128xf32>
    tpu.vector_store %arg5[%c1_12, %c0_13], %37 {strides = array<i32>} : memref<8x128xf32, #tpu.memory_space<vmem>>, vector<1x128xf32>,
    %cst_14 = arith.constant 0.000000e+00 : f32
    %51 = vector.broadcast %cst_14 : f32 to vector<1x128xf32>
    %52 = arith.subf %51, %37 : vector<1x128xf32>
    %c2_15 = arith.constant 2 : index
    %c0_16 = arith.constant 0 : index
    %53 = vector.load %arg5[%c2_15, %c0_16] : memref<8x128xf32, #tpu.memory_space<vmem>>, vector<1x128xf32>
    tpu.vector_store %arg5[%c2_15, %c0_16], %52 {strides = array<i32>} : memref<8x128xf32, #tpu.memory_space<vmem>>, vector<1x128xf32>,
    %c3_17 = arith.constant 3 : index
    %c0_18 = arith.constant 0 : index
    %54 = vector.load %arg5[%c3_17, %c0_18] : memref<8x128xf32, #tpu.memory_space<vmem>>, vector<1x128xf32>
    tpu.vector_store %arg5[%c3_17, %c0_18], %36 {strides = array<i32>} : memref<8x128xf32, #tpu.memory_space<vmem>>, vector<1x128xf32>,
    %c4 = arith.constant 4 : index
    %c0_19 = arith.constant 0 : index
    %55 = vector.load %arg5[%c4, %c0_19] : memref<8x128xf32, #tpu.memory_space<vmem>>, vector<1x128xf32>
    tpu.vector_store %arg5[%c4, %c0_19], %42 {strides = array<i32>} : memref<8x128xf32, #tpu.memory_space<vmem>>, vector<1x128xf32>,
    %c5 = arith.constant 5 : index
    %c0_20 = arith.constant 0 : index
    %56 = vector.load %arg5[%c5, %c0_20] : memref<8x128xf32, #tpu.memory_space<vmem>>, vector<1x128xf32>
    tpu.vector_store %arg5[%c5, %c0_20], %47 {strides = array<i32>} : memref<8x128xf32, #tpu.memory_space<vmem>>, vector<1x128xf32>,
    %c6 = arith.constant 6 : index
    %c0_21 = arith.constant 0 : index
    %57 = vector.load %arg5[%c6, %c0_21] : memref<8x128xf32, #tpu.memory_space<vmem>>, vector<1x128xf32>
    tpu.vector_store %arg5[%c6, %c0_21], %48 {strides = array<i32>} : memref<8x128xf32, #tpu.memory_space<vmem>>, vector<1x128xf32>,
    %c7 = arith.constant 7 : index
    %c0_22 = arith.constant 0 : index
    %58 = vector.load %arg5[%c7, %c0_22] : memref<8x128xf32, #tpu.memory_space<vmem>>, vector<1x128xf32>
    tpu.vector_store %arg5[%c7, %c0_22], %48 {strides = array<i32>} : memref<8x128xf32, #tpu.memory_space<vmem>>, vector<1x128xf32>,
    return
  }
  func.func @transform_0(%arg0: i32) -> (i32, i32) {
    %c0_i32 = arith.constant 0 : i32
    %c0_i32_0 = arith.constant 0 : i32
    return %arg0, %c0_i32 : i32, i32
  }
  func.func @transform_1(%arg0: i32) -> (i32, i32) {
    %c0_i32 = arith.constant 0 : i32
    %c0_i32_0 = arith.constant 0 : i32
    %c0_i32_1 = arith.constant 0 : i32
    return %c0_i32, %c0_i32_0 : i32, i32
  }
  func.func @transform_2(%arg0: i32) -> (i32, i32) {
    %c0_i32 = arith.constant 0 : i32
    %c0_i32_0 = arith.constant 0 : i32
    %c0_i32_1 = arith.constant 0 : i32
    return %c0_i32, %c0_i32_0 : i32, i32
  }
  func.func @transform_3(%arg0: i32) -> i32 {
    %c0_i32 = arith.constant 0 : i32
    %c0_i32_0 = arith.constant 0 : i32
    return %c0_i32 : i32
  }
  func.func @transform_4(%arg0: i32) -> (i32, i32) {
    %c0_i32 = arith.constant 0 : i32
    %c0_i32_0 = arith.constant 0 : i32
    return %c0_i32, %arg0 : i32, i32
  }
}

</mosaic_0001>

<bundles_post_ra>
// kernel: tpu_custom_call.1
= control target key start
LH: loop header
LB: loop body
LE: loop exit
PB: predicated region body
PF: predicated region fallthrough
CT: control target
= control target key end

     0   :  { %9 = vsyncpa [#allocation3], 0  ;;  %s912_s0 = inlined_call_operand.hbm [shape: f32[2,16], index: 0, kind: input, shape index: {}]   ;;  %s913_s1 = inlined_call_operand.hbm [shape: f32[8,16], index: 1, kind: input, shape index: {}]   ;;  %s914_s2 = inlined_call_operand.hbm [shape: f32[8,16], index: 2, kind: input, shape index: {}]   ;;  %s915_s3 = inlined_call_operand.vmem [shape: f32[4], index: 3, kind: input, shape index: {}]   ;;  %s916_s4 = inlined_call_operand.hbm [shape: f32[8,128], index: 4, kind: output, shape index: {}]  }
   0x1   :  { %10 = vsyncpa [#allocation7], 0 }
   0x2   :  { %11 = vsyncpa [#allocation5], 0 }
   0x3   :  { %12 = vsyncpa [#allocation4], 0 }
   0x4   :  { %17 = vsyncadd [#allocation3], 2016  ;;  %s762_s15 = smov [#allocation6]   ;;  %s763_s17 = smov [#allocation2]  }
   0x5   :  { %s31_s16 = sshll.u32 %s762_s15, 4  ;;  %s18_s18 = sshll.u32 %s763_s17, 4  ;;  %s32_s16 = int_to_ptr.vmem [resolvable:$true] %s31_s16  ;;  %s797_s18 = int_to_ptr.vmem [resolvable:$true] %s18_s18 }
   0x6   :  { %s654_s21 = scalar_lea.hbm %s913_s1, 128 }
   0x7   :  { %p655_p0 = scmp.ne.s32.totalorder %s913_s1, %s654_s21  ;;  %p658_p1 = scmp.lt.u32.totalorder %s654_s21, %s913_s1 }
   0x9   :  { %p660_p2 = pnand %p658_p1, %p655_p0 }
   0xb   :  { %663 = shalt.err (!%p660_p2)
}
   0xc   :  { %s664_s26 = scalar_lea.vmem %s32_s16, 128  ;;  %p669_p4 = scmp.lt.s32.totalorder %s32_s16, %s32_s16 }
   0xd   :  { %p665_p3 = scmp.ne.s32.totalorder %s32_s16, %s664_s26  ;;  %p670_p5 = scmp.lt.s32.totalorder %s664_s26, %s664_s26 }
   0xf   :  { %p671_p6 = por %p670_p5, %p669_p4 }
  0x11   :  { %p672_p7 = pnand %p671_p6, %p665_p3 }
  0x13   :  { %675 = shalt.err (!%p672_p7)
}
  0x14   :  { %34 = dma.hbm_to_vmem [thread:$0]  %s913_s1, 128, %s32_s16, [#allocation7]  }
  0x15   :  { %s676_s5 = scalar_lea.hbm %s912_s0, 32 }
  0x16   :  { %p677_p8 = scmp.ne.s32.totalorder %s912_s0, %s676_s5  ;;  %p680_p9 = scmp.lt.u32.totalorder %s676_s5, %s912_s0 }
  0x18   :  { %p682_p10 = pnand %p680_p9, %p677_p8 }
  0x1a   :  { %685 = shalt.err (!%p682_p10)
}
  0x1b   :  { %s686_s10 = scalar_lea.vmem %s797_s18, 32  ;;  %s690_s1 = scalar_lea.vmem %s797_s18, 2048 }
  0x1c   :  { %p687_p11 = scmp.ne.s32.totalorder %s797_s18, %s686_s10  ;;  %p691_p12 = scmp.lt.s32.totalorder %s797_s18, %s797_s18 }
  0x1d   :  { %p692_p13 = scmp.lt.s32.totalorder %s690_s1, %s686_s10 }
  0x1f   :  { %p693_p0 = por %p692_p13, %p691_p12 }
  0x21   :  { %p694_p1 = pnand %p693_p0, %p687_p11 }
  0x23   :  { %697 = shalt.err (!%p694_p1)
}
  0x24   :  { %s764_s11 = smov 32   ;;  %s765_s12 = smov 2  }
  0x25   :  { %24 = dma.hbm_to_vmem [thread:$0]  %s912_s0, 32, %s797_s18, [#allocation3], %s764_s11, %s764_s11, %s765_s12  }
  0x26   :  { %s51_s17 = sshll.u32 %s915_s3, 4  ;;  %s766_s19 = smov [#allocation8]   ;;  %s52_s17 = int_to_ptr.vmem [resolvable:$true] %s51_s17 }
  0x27   :  { %s41_s20 = sshll.u32 %s766_s19, 4  ;;  %s698_s23 = scalar_lea.hbm %s914_s2, 128  ;;  %s42_s20 = int_to_ptr.vmem [resolvable:$true] %s41_s20 }
  0x28   :  { %p699_p2 = scmp.ne.s32.totalorder %s914_s2, %s698_s23  ;;  %p702_p3 = scmp.lt.u32.totalorder %s698_s23, %s914_s2 }
  0x2a   :  { %p704_p4 = pnand %p702_p3, %p699_p2 }
  0x2c   :  { %707 = shalt.err (!%p704_p4)
}
  0x2d   :  { %s708_s0 = scalar_lea.vmem %s42_s20, 128  ;;  %p713_p6 = scmp.lt.s32.totalorder %s42_s20, %s42_s20 }
  0x2e   :  { %p709_p5 = scmp.ne.s32.totalorder %s42_s20, %s708_s0  ;;  %p714_p7 = scmp.lt.s32.totalorder %s708_s0, %s708_s0 }
  0x30   :  { %p715_p8 = por %p714_p7, %p713_p6 }
  0x32   :  { %p716_p9 = pnand %p715_p8, %p709_p5 }
  0x34   :  { %719 = shalt.err (!%p716_p9)
}
  0x35   :  { %44 = dma.hbm_to_vmem [thread:$0]  %s914_s2, 128, %s42_s20, [#allocation7]  }
  0x36   :  { %s720_s28 = scalar_lea.vmem %s52_s17, 16  ;;  %p725_p11 = scmp.lt.s32.totalorder %s52_s17, %s52_s17 }
  0x37   :  { %p721_p10 = scmp.ne.s32.totalorder %s52_s17, %s720_s28  ;;  %p726_p12 = scmp.lt.s32.totalorder %s720_s28, %s720_s28 }
  0x39   :  { %p727_p13 = por %p726_p12, %p725_p11 }
  0x3b   :  { %p728_p0 = pnand %p727_p13, %p721_p10 }
  0x3d   :  { %731 = shalt.err (!%p728_p0)
}
  0x3e   :  { %s767_s29 = smov [#allocation9]  }
  0x3f   :  { %54 = dma.vmem_to_smem %s52_s17, 16, %s767_s29, [#allocation5]  }
  0x40   :  { %754 = dma.done.wait [#allocation3], 2048  }
  0x41   :  { %755 = vsyncadd [#allocation3], 4294965248 }
  0x42   :  { %756 = dma.done.wait [#allocation7], 256  }
  0x43   :  { %757 = vsyncadd [#allocation7], 4294967040 }
  0x44   :  { %758 = dma.done.wait [#allocation5], 16  }
  0x45   :  { %759 = vsyncadd [#allocation5], 4294967280 }
  0x46   :  { %67 = sfence }
  0x47   :  { %v68_v0 = vld [vmem:[#allocation2] sm:$0xff]  ;;  %v69_v1 = vld [vmem:[#allocation2 + $0x8] sm:$0xff]  ;;  %vm102_vm0 = vcmask 130048   ;;  %v768_v2 = vmov 0.0|0.0   ;;  %v70_v7 = vld [vmem:[#allocation2 + $0x10] sm:$0xff]  ;;  %vm769_vm2 = vmmov 0  }
  0x48   :  { %609 = vmatprep.subr.bf16.mxu0 %v768_v2  ;;  %577 = vmatprep.subr.bf16.mxu1 %v768_v2  ;;  %vm848_vm1 = vmpackc.low %vm102_vm0, %vm102_vm0  ;;  %v610_v4 = vpack.c.bf16 %v69_v1, %v68_v0  ;;  %v86_v5 = vmul.f32 %v68_v0, %v68_v0  ;;  %v87_v6 = vmul.f32 %v69_v1, %v69_v1  ;;  %v71_v8 = vld [vmem:[#allocation2 + $0x18] sm:$0xff]  ;;  %v770_v9 = vmov 0.0   ;;  %v72_v15 = vld [vmem:[#allocation2 + $0x20] sm:$0xff]  ;;  %s471_s2 = sld [smem:[#allocation9 + $0x2]]  ;;  %s472_s30 = sld [smem:[#allocation9 + $0x3]] }
  0x49   :  { %574 = vmatprep.mubr.msk.f32.mxu0 %vm769_vm2, %v770_v9  ;;  %417 = vst [vmem:[#allocation10 + $0x6] sm:$0x1] %v770_v9  ;;  %418 = vst [vmem:[#allocation10 + $0x7] sm:$0x1] %v770_v9  ;;  %v88_v11 = vmul.f32 %v70_v7, %v70_v7  ;;  %v89_v12 = vmul.f32 %v71_v8, %v71_v8  ;;  %v614_v13 = vpack.c.bf16 %v71_v8, %v70_v7  ;;  %v73_v16 = vld [vmem:[#allocation2 + $0x28] sm:$0xff]  ;;  %v74_v21 = vld [vmem:[#allocation2 + $0x30] sm:$0xff] }
  0x4a   :  { %612 = vmatpush3.bf16.xpose.msk.msra.mxu0 %vm848_vm1, %v610_v4  ;;  %v578_v10 = vpack.c.bf16 %v87_v6, %v86_v5  ;;  %539 = vmatprep.mubr.msk.f32.mxu1 %vm769_vm2, %v770_v9  ;;  %v90_v17 = vmul.f32 %v72_v15, %v72_v15  ;;  %v91_v18 = vmul.f32 %v73_v16, %v73_v16  ;;  %v75_v22 = vld [vmem:[#allocation2 + $0x38] sm:$0xff]  ;;  %v76_v27 = vld [vmem:[#allocation2 + $0x40] sm:$0xff]  ;;  %v77_v28 = vld [vmem:[#allocation2 + $0x48] sm:$0xff]  ;;  %s345_s5 = sld [smem:[#allocation9]]  ;;  %s470_s6 = sld [smem:[#allocation9 + $0x1]] }
  0x4b   :  { %613 = vmatprep.subr.bf16.mxu0 %v768_v2  ;;  %v582_v14 = vpack.c.bf16 %v89_v12, %v88_v11  ;;  %v618_v19 = vpack.c.bf16 %v73_v16, %v72_v15  ;;  %v92_v23 = vmul.f32 %v74_v21, %v74_v21  ;;  %v93_v24 = vmul.f32 %v75_v22, %v75_v22  ;;  %v78_v33 = vld [vmem:[#allocation2 + $0x50] sm:$0xff]  ;;  %v79_v34 = vld [vmem:[#allocation2 + $0x58] sm:$0xff]  ;;  %v80_v39 = vld [vmem:[#allocation2 + $0x60] sm:$0xff]  ;;  %s771_s7 = smov [#allocation10]  }
  0x4c   :  { %580 = vmatpush3.bf16.xpose.msk.msra.mxu1 %vm848_vm1, %v578_v10  ;;  %v586_v20 = vpack.c.bf16 %v91_v18, %v90_v17  ;;  %v622_v25 = vpack.c.bf16 %v75_v22, %v74_v21  ;;  %v94_v29 = vmul.f32 %v76_v27, %v76_v27  ;;  %v95_v30 = vmul.f32 %v77_v28, %v77_v28  ;;  %v81_v40 = vld [vmem:[#allocation2 + $0x68] sm:$0xff]  ;;  %v82_v45 = vld [vmem:[#allocation2 + $0x70] sm:$0xff]  ;;  %v83_v46 = vld [vmem:[#allocation2 + $0x78] sm:$0xff]  ;;  %s425_s8 = sshll.u32 %s771_s7, 4  ;;  %s426_s8 = int_to_ptr.vmem [resolvable:$true] %s425_s8 }
  0x4d   :  { %581 = vmatprep.subr.bf16.mxu1 %v768_v2  ;;  %v590_v26 = vpack.c.bf16 %v93_v24, %v92_v23  ;;  %v626_v31 = vpack.c.bf16 %v77_v28, %v76_v27  ;;  %v96_v35 = vmul.f32 %v78_v33, %v78_v33  ;;  %v97_v36 = vmul.f32 %v79_v34, %v79_v34  ;;  %v84_v51 = vld [vmem:[#allocation6] sm:$0xff]  ;;  %v85_v52 = vld [vmem:[#allocation8] sm:$0xff]  ;;  %s732_s9 = scalar_lea.vmem %s426_s8, 128  ;;  %p737_p2 = scmp.lt.s32.totalorder %s426_s8, %s426_s8 }
  0x4e   :  { %v594_v32 = vpack.c.bf16 %v95_v30, %v94_v29  ;;  %v630_v37 = vpack.c.bf16 %v79_v34, %v78_v33  ;;  %v98_v41 = vmul.f32 %v80_v39, %v80_v39  ;;  %v99_v42 = vmul.f32 %v81_v40, %v81_v40  ;;  %p733_p1 = scmp.ne.s32.totalorder %s426_s8, %s732_s9  ;;  %p738_p3 = scmp.lt.s32.totalorder %s732_s9, %s732_s9 }
  0x4f   :  { %v598_v38 = vpack.c.bf16 %v97_v36, %v96_v35  ;;  %v634_v43 = vpack.c.bf16 %v81_v40, %v80_v39  ;;  %v100_v47 = vmul.f32 %v82_v45, %v82_v45  ;;  %v101_v48 = vmul.f32 %v83_v46, %v83_v46 }
  0x50   :  { %v602_v44 = vpack.c.bf16 %v99_v42, %v98_v41  ;;  %v638_v49 = vpack.c.bf16 %v83_v46, %v82_v45  ;;  %v349_v62 = vstv %s471_s2  ;;  %v355_v63 = vstv %s472_s30  ;;  %p739_p4 = por %p738_p3, %p737_p2 }
  0x51   :  { %v606_v50 = vpack.c.bf16 %v101_v48, %v100_v47  ;;  %v396_v27 = vstv %s345_s5  ;;  %v408_v28 = vstv %s470_s6 }
  0x52   :  { %616 = vmatpush3.bf16.xpose.msk.msra.mxu0 %vm848_vm1, %v614_v13  ;;  %p740_p5 = pnand %p739_p4, %p733_p1 }
  0x53   :  { %617 = vmatprep.subr.bf16.mxu0 %v768_v2 }
  0x54   :  { %584 = vmatpush3.bf16.xpose.msk.msra.mxu1 %vm848_vm1, %v582_v14 }
  0x55   :  { %585 = vmatprep.subr.bf16.mxu1 %v768_v2 }
  0x5a   :  { %620 = vmatpush3.bf16.xpose.msk.msra.mxu0 %vm848_vm1, %v618_v19 }
  0x5b   :  { %621 = vmatprep.subr.bf16.mxu0 %v768_v2 }
  0x5c   :  { %588 = vmatpush3.bf16.xpose.msk.msra.mxu1 %vm848_vm1, %v586_v20 }
  0x5d   :  { %589 = vmatprep.subr.bf16.mxu1 %v768_v2 }
  0x62   :  { %624 = vmatpush3.bf16.xpose.msk.msra.mxu0 %vm848_vm1, %v622_v25 }
  0x63   :  { %625 = vmatprep.subr.bf16.mxu0 %v768_v2 }
  0x64   :  { %592 = vmatpush3.bf16.xpose.msk.msra.mxu1 %vm848_vm1, %v590_v26 }
  0x65   :  { %593 = vmatprep.subr.bf16.mxu1 %v768_v2 }
  0x6a   :  { %628 = vmatpush3.bf16.xpose.msk.msra.mxu0 %vm848_vm1, %v626_v31 }
  0x6b   :  { %629 = vmatprep.subr.bf16.mxu0 %v768_v2 }
  0x6c   :  { %596 = vmatpush3.bf16.xpose.msk.msra.mxu1 %vm848_vm1, %v594_v32 }
  0x6d   :  { %597 = vmatprep.subr.bf16.mxu1 %v768_v2 }
  0x72   :  { %632 = vmatpush3.bf16.xpose.msk.msra.mxu0 %vm848_vm1, %v630_v37 }
  0x73   :  { %633 = vmatprep.subr.bf16.mxu0 %v768_v2 }
  0x74   :  { %600 = vmatpush3.bf16.xpose.msk.msra.mxu1 %vm848_vm1, %v598_v38 }
  0x75   :  { %601 = vmatprep.subr.bf16.mxu1 %v768_v2 }
  0x7a   :  { %636 = vmatpush3.bf16.xpose.msk.msra.mxu0 %vm848_vm1, %v634_v43 }
  0x7b   :  { %637 = vmatprep.subr.bf16.mxu0 %v768_v2 }
  0x7c   :  { %604 = vmatpush3.bf16.xpose.msk.msra.mxu1 %vm848_vm1, %v602_v44 }
  0x7d   :  { %605 = vmatprep.subr.bf16.mxu1 %v768_v2 }
  0x82   :  { %640 = vmatpush3.bf16.xpose.msk.msra.mxu0 %vm848_vm1, %v638_v49 }
  0x84   :  { %608 = vmatpush3.bf16.xpose.msk.msra.mxu1 %vm848_vm1, %v606_v50 }
  0x89   :  { %575 = vmatmul.mubr.msk.f32.vlgmr.msra.gmra.mrb[0].mxu0 %vm102_vm0, %v84_v51 }
  0x8b   :  { %540 = vmatmul.mubr.msk.f32.vlgmr.msra.gmra.mrb[0].mxu1 %vm102_vm0, %v85_v52 }
 0x15c   :  { %v341_v53 = vpop.f32.mrb[0].mxu0 }
 0x15d   :  { %v576_v54 = vpop.f32.mrb[1].mxu0 }
 0x15e   :  { %v220_v55 = vpop.f32.mrb[0].mxu1 }
 0x15f   :  { %v342_v56 = vadd.f32 %v341_v53, %v220_v55  ;;  %v541_v57 = vpop.f32.mrb[1].mxu1 }
 0x161   :  { %v365_v58 = vmul.f32 %v342_v56, %v342_v56  ;;  %v350_v2 = vmul.f32 %v349_v62, %v342_v56  ;;  %v356_v3 = vmul.f32 %v355_v63, %v342_v56 }
 0x163   :  { %v367_v59 = vrot.slane %v365_v58, 1  ;;  %v352_v4 = vrot.slane %v350_v2, 6  ;;  %v361_v5 = vrot.slane %v356_v3, 5  ;;  %v358_v8 = vrot.slane %v356_v3, 7 }
 0x165   :  { %v369_v60 = vadd.f32 %v367_v59, %v365_v58  ;;  %v354_v6 = vsub.f32 %v342_v56, %v352_v4  ;;  %v363_v7 = vsub.f32 %v342_v56, %v361_v5 }
 0x167   :  { %v370_v61 = vmul.f32 8.0, %v369_v60  ;;  %v360_v10 = vsub.f32 %v354_v6, %v358_v8  ;;  %v364_v11 = vadd.f32 %v363_v7, %v352_v4 }
 0x169   :  { %v372_v0 = vrot.slane %v370_v61, 4 }
 0x16b   :  { %v374_v1 = vsub.f32 %v342_v56, %v372_v0 }
 0x16d   :  { %652 = vrcp.f32 %v374_v1 }
 0x177   :  { %v653_v9 = vpop.eup %652 }
 0x178   :  { %v378_v12 = vrot.slane %v653_v9, 2  ;;  %v381_v13 = vrot.slane %v653_v9, 1 }
 0x17a   :  { %v380_v14 = vmul.f32 %v378_v12, %v360_v10  ;;  %v383_v15 = vmul.f32 %v381_v13, %v364_v11 }
 0x17c   :  { %v385_v16 = vrot.slane %v380_v14, 2  ;;  %v389_v17 = vrot.slane %v383_v15, 2  ;;  %v398_v18 = vrot.slane %v383_v15, 3  ;;  %v401_v19 = vrot.slane %v380_v14, 1  ;;  %410 = vst [vmem:[#allocation10 - $0x2] sm:$0x4] %v380_v14 }
 0x17d   :  { %411 = vst [vmem:[#allocation10 - $0x2] sm:$0x8] %v383_v15  ;;  %414 = vst [vmem:[#allocation10 + $0x1] sm:$0x4] %v380_v14  ;;  %v412_v20 = vsub.f32 0.0, %v383_v15 }
 0x17e   :  { %v391_v21 = vmul.f32 %v389_v17, %v342_v56  ;;  %v403_v22 = vmul.f32 %v401_v19, %v342_v56  ;;  %v387_v23 = vmul.f32 %v385_v16, %v342_v56  ;;  %v400_v25 = vmul.f32 %v398_v18, %v342_v56 }
 0x17f   :  { %413 = vst [vmem:[#allocation10 - $0x1] sm:$0x8] %v412_v20 }
 0x180   :  { %v393_v24 = vrot.slane %v391_v21, 1  ;;  %v405_v26 = vrot.slane %v403_v22, 1 }
 0x182   :  { %v395_v29 = vsub.f32 %v387_v23, %v393_v24  ;;  %v407_v30 = vadd.f32 %v405_v26, %v400_v25 }
 0x184   :  { %v397_v31 = vsub.f32 %v396_v27, %v395_v29  ;;  %v409_v32 = vsub.f32 %v408_v28, %v407_v30 }
 0x186   :  { %415 = vst [vmem:[#allocation10 + $0x4] sm:$0x1] %v397_v31  ;;  %416 = vst [vmem:[#allocation10 + $0x5] sm:$0x1] %v409_v32 }
 0x187   :  { %743 = shalt.err (!%p740_p5)
}
 0x188   :  { %s744_s11 = scalar_lea.hbm %s916_s4, 128 }
 0x189   :  { %p745_p6 = scmp.ne.s32.totalorder %s916_s4, %s744_s11  ;;  %p748_p7 = scmp.lt.u32.totalorder %s744_s11, %s916_s4 }
 0x18b   :  { %p750_p8 = pnand %p748_p7, %p745_p6 }
 0x18d   :  { %753 = shalt.err (!%p750_p8)
}
 0x18e   :  { %428 = dma.vmem_to_hbm [thread:$0]  %s426_s8, 128, %s916_s4, [#allocation4]  }
 0x18f   :  { %760 = dma.done.wait [#allocation4], 128  }
 0x190   :  { %761 = vsyncadd [#allocation4], 4294967168 }
 0x191   :  { %432 = vsyncpa [#allocation3], 1 }
 0x192   :  { %433 = vsyncpa [#allocation7], 1 }
 0x193   :  { %434 = vsyncpa [#allocation4], 1 }
 0x194   :  { %435 = vsyncpa [#allocation5], 1 }

</bundles_post_ra>
